<compile_context>
chip_gen: v7x
topology: tpu7x:2x2x1
jax: 0.10.0
libtpu: 0.0.40
codegen_flags: <defaults>
</compile_context>

<pallas_src>
import jax
import jax.numpy as jnp
from jax.experimental import pallas as pl
from jax.experimental.pallas import tpu as pltpu

_LANE = 128
_SUBLANE = 8


def _round_up(n, m):
    return ((n + m - 1) // m) * m


def _pad2(a, rows, cols):
    r, c = a.shape
    return jnp.pad(a, ((0, rows - r), (0, cols - c)))


def _vae_kernel(x_ref, eps_ref,
                we1_ref, be1_ref,
                wmv_ref, bmv_ref,
                wd1_ref, bd1_ref,
                wd2_ref, bd2_ref,
                mean_ref, logvar_ref, pred_ref):
    """One batch tile of the fused VAE forward.

    Matmuls run on the MXU (bf16 in, f32 accumulate); bias/ReLU/exp/sigmoid
    epilogues stay in f32 on the VPU/EUP.  mean|log_var share one lane-dense
    (Hp, 2*Zp) projection, split by static lane-aligned slices.
    """
    zp = mean_ref.shape[-1]
    cdt = we1_ref.dtype  # MXU input dtype (bf16 by default)

    x = x_ref[...]

    # ---- encoder hidden ----
    h = jnp.dot(x, we1_ref[...], preferred_element_type=jnp.float32)
    h = jnp.maximum(h + be1_ref[...].astype(jnp.float32), 0.0)

    # ---- fused (mean | log_var) head: one lane-dense matmul ----
    head = jnp.dot(h.astype(cdt), wmv_ref[...], preferred_element_type=jnp.float32)
    head = head + bmv_ref[...].astype(jnp.float32)
    mean = head[:, :zp]
    log_var = head[:, zp:]

    # ---- reparameterization: latent = eps * exp(log_var / 2) + mean ----
    latent = eps_ref[...].astype(jnp.float32) * jnp.exp(log_var * 0.5) + mean

    # ---- decoder ----
    hd = jnp.dot(latent.astype(cdt), wd1_ref[...], preferred_element_type=jnp.float32)
    hd = jnp.maximum(hd + bd1_ref[...].astype(jnp.float32), 0.0)
    logits = jnp.dot(hd.astype(cdt), wd2_ref[...], preferred_element_type=jnp.float32)
    logits = logits + bd2_ref[...].astype(jnp.float32)
    pred = jax.nn.sigmoid(logits)  # exp/recip route to the otherwise-idle EUP slot

    mean_ref[...] = mean.astype(mean_ref.dtype)
    logvar_ref[...] = log_var.astype(logvar_ref.dtype)
    pred_ref[...] = pred.astype(pred_ref.dtype)


def vae_forward(x, eps, params, *, tm=None, compute_dtype=jnp.bfloat16):
    """Fused VAE forward.  x: (B, D) f32, eps: (B, Z) f32 reparam noise."""
    B, D = x.shape
    H = params["we1"].shape[1]
    Z = params["wm"].shape[1]

    Dp = _round_up(D, _LANE)
    Hp = _round_up(H, _LANE)
    Zp = _round_up(Z, _LANE)

    # --- derive a batch tile that fits weights + 2x double-buffered activation
    # tiles comfortably under the default scoped-VMEM budget (safe on v7x's
    # 64 MiB VMEM; no vmem_limit_bytes override needed). ---
    w_bytes = 2 * (Dp * Hp + Hp * 2 * Zp + Zp * Hp + Hp * Dp)   # bf16 weights
    w_bytes += 4 * (Hp + 2 * Zp + Hp + Dp)                      # f32 biases
    budget = 24 << 20
    if tm is None:
        tm = _SUBLANE
        for cand in (512, 256, 128, 64, 32, 16, 8):
            act_in = cand * (2 * Dp + 4 * Zp)          # x (bf16) + eps (f32)
            act_out = cand * 4 * (Zp + Zp + Dp)        # f32 outputs
            if w_bytes + 2 * (act_in + act_out) <= budget:
                tm = cand
                break
        tm = min(tm, _round_up(B, _SUBLANE))
    tm = _round_up(tm, _SUBLANE)
    Bp = _round_up(B, tm)
    grid = (Bp // tm,)

    cdt = compute_dtype
    x_p = _pad2(x, Bp, Dp).astype(cdt)
    eps_p = _pad2(eps, Bp, Zp).astype(jnp.float32)

    we1 = _pad2(params["we1"], Dp, Hp).astype(cdt)
    be1 = _pad2(params["be1"], 1, Hp).astype(jnp.float32)
    wmv = jnp.concatenate(
        [_pad2(params["wm"], Hp, Zp), _pad2(params["wv"], Hp, Zp)], axis=1).astype(cdt)
    bmv = jnp.concatenate(
        [_pad2(params["bm"], 1, Zp), _pad2(params["bv"], 1, Zp)], axis=1).astype(jnp.float32)
    wd1 = _pad2(params["wd1"], Zp, Hp).astype(cdt)
    bd1 = _pad2(params["bd1"], 1, Hp).astype(jnp.float32)
    wd2 = _pad2(params["wd2"], Hp, Dp).astype(cdt)
    bd2 = _pad2(params["bd2"], 1, Dp).astype(jnp.float32)

    def tiled(cols):                       # batch-tiled activations / outputs
        return pl.BlockSpec((tm, cols), lambda i: (i, 0))

    def resident(shape):                   # weights/biases: same block every step
        return pl.BlockSpec(shape, lambda i: (0, 0))

    in_specs = [
        tiled(Dp),                         # x
        tiled(Zp),                         # eps
        resident((Dp, Hp)), resident((1, Hp)),          # We1, be1
        resident((Hp, 2 * Zp)), resident((1, 2 * Zp)),  # [Wm|Wv], [bm|bv]
        resident((Zp, Hp)), resident((1, Hp)),          # Wd1, bd1
        resident((Hp, Dp)), resident((1, Dp)),          # Wd2, bd2
    ]
    out_specs = (tiled(Zp), tiled(Zp), tiled(Dp))
    out_shape = (
        jax.ShapeDtypeStruct((Bp, Zp), jnp.float32),  # mean (padded)
        jax.ShapeDtypeStruct((Bp, Zp), jnp.float32),  # log_var (padded)
        jax.ShapeDtypeStruct((Bp, Dp), jnp.float32),  # pred (padded)
    )

    mean_p, logvar_p, pred_p = pl.pallas_call(
        _vae_kernel,
        out_shape=out_shape,
        grid=grid,
        in_specs=in_specs,
        out_specs=out_specs,
        compiler_params=pltpu.CompilerParams(
            dimension_semantics=("parallel",)),
    )(x_p, eps_p, we1, be1, wmv, bmv, wd1, bd1, wd2, bd2)

    return mean_p[:B, :Z], logvar_p[:B, :Z], pred_p[:B, :D]


def kl_loss(mean, log_var):
    # Matches the module's kl_loss verbatim (note the module uses +1).
    per_example = jnp.sum(jnp.exp(log_var) + mean ** 2 + 1.0 - log_var, axis=1) / 2.0
    return jnp.mean(per_example)


def _init_linear(key, fan_in, fan_out):
    # PyTorch nn.Linear default: U(-1/sqrt(fan_in), 1/sqrt(fan_in))
    kw, kb = jax.random.split(key)
    bound = 1.0 / jnp.sqrt(fan_in)
    w = jax.random.uniform(kw, (fan_in, fan_out), jnp.float32, -bound, bound)
    b = jax.random.uniform(kb, (1, fan_out), jnp.float32, -bound, bound)
    return w, b


def init_params(key, D, H, Z):
    keys = jax.random.split(key, 5)
    we1, be1 = _init_linear(keys[0], D, H)
    wm, bm = _init_linear(keys[1], H, Z)
    wv, bv = _init_linear(keys[2], H, Z)
    wd1, bd1 = _init_linear(keys[3], Z, H)
    wd2, bd2 = _init_linear(keys[4], H, D)
    return dict(we1=we1, be1=be1, wm=wm, bm=bm, wv=wv, bv=bv,
                wd1=wd1, bd1=bd1, wd2=wd2, bd2=bd2)


if __name__ == "__main__":
    B, D, H, Z = 32, 256, 128, 32

    key = jax.random.PRNGKey(0)
    k_x, k_eps, k_params = jax.random.split(key, 3)

    x = jax.random.normal(k_x, (B, D), dtype=jnp.float32)
    eps = jax.random.normal(k_eps, (B, Z), dtype=jnp.float32)  # reparam noise
    params = init_params(k_params, D, H, Z)

    # tm=8 forces a 4-step pipelined batch grid even at this small demo size.
    mean, log_var, pred = jax.block_until_ready(vae_forward(x, eps, params, tm=8))

    # Pure-JAX reference with the same bf16 MXU inputs / f32 accumulation.
    def ref(x, eps, p, dt=jnp.bfloat16):
        f32 = jnp.float32
        h = jnp.maximum(
            jnp.dot(x.astype(dt), p["we1"].astype(dt), preferred_element_type=f32)
            + p["be1"], 0.0)
        hc = h.astype(dt)
        m = jnp.dot(hc, p["wm"].astype(dt), preferred_element_type=f32) + p["bm"]
        lv = jnp.dot(hc, p["wv"].astype(dt), preferred_element_type=f32) + p["bv"]
        lat = eps * jnp.exp(lv * 0.5) + m
        hd = jnp.maximum(
            jnp.dot(lat.astype(dt), p["wd1"].astype(dt), preferred_element_type=f32)
            + p["bd1"], 0.0)
        pr = jax.nn.sigmoid(
            jnp.dot(hd.astype(dt), p["wd2"].astype(dt), preferred_element_type=f32)
            + p["bd2"])
        return m, lv, pr

    m_ref, lv_ref, pr_ref = ref(x, eps, params)
    assert jnp.allclose(mean, m_ref, atol=5e-3, rtol=5e-3), "mean mismatch"
    assert jnp.allclose(log_var, lv_ref, atol=5e-3, rtol=5e-3), "log_var mismatch"
    assert jnp.allclose(pred, pr_ref, atol=5e-3, rtol=5e-3), "pred mismatch"

    _ = kl_loss(mean, log_var)  # exercised for parity with the module API

    print("KERNEL_OK")
</pallas_src>

<mosaic_0001>
module attributes {stable_mosaic.version = 11 : i64} {
  func.func @_vae_kernel(%arg0: i32, %arg1: memref<8x256xbf16, #tpu.memory_space<vmem>>, %arg2: memref<8x128xf32, #tpu.memory_space<vmem>>, %arg3: memref<256x128xbf16, #tpu.memory_space<vmem>>, %arg4: memref<1x128xf32, #tpu.memory_space<vmem>>, %arg5: memref<128x256xbf16, #tpu.memory_space<vmem>>, %arg6: memref<1x256xf32, #tpu.memory_space<vmem>>, %arg7: memref<128x128xbf16, #tpu.memory_space<vmem>>, %arg8: memref<1x128xf32, #tpu.memory_space<vmem>>, %arg9: memref<128x256xbf16, #tpu.memory_space<vmem>>, %arg10: memref<1x256xf32, #tpu.memory_space<vmem>>, %arg11: memref<8x128xf32, #tpu.memory_space<vmem>>, %arg12: memref<8x128xf32, #tpu.memory_space<vmem>>, %arg13: memref<8x256xf32, #tpu.memory_space<vmem>>) attributes {dimension_semantics = [#tpu.dimension_semantics<parallel>], iteration_bounds = array<i64: 4>, scalar_prefetch = 0 : i64, scratch_operands = 0 : i64, tpu.core_type = #tpu.core_type<tc>, window_params = [{transform_indices = @transform_0, window_bounds = array<i64: 8, 256>}, {transform_indices = @transform_1, window_bounds = array<i64: 8, 128>}, {pipeline_mode = #tpu.pipeline_mode<synchronous>, transform_indices = @transform_2, window_bounds = array<i64: 256, 128>}, {pipeline_mode = #tpu.pipeline_mode<synchronous>, transform_indices = @transform_3, window_bounds = array<i64: 1, 128>}, {pipeline_mode = #tpu.pipeline_mode<synchronous>, transform_indices = @transform_4, window_bounds = array<i64: 128, 256>}, {pipeline_mode = #tpu.pipeline_mode<synchronous>, transform_indices = @transform_5, window_bounds = array<i64: 1, 256>}, {pipeline_mode = #tpu.pipeline_mode<synchronous>, transform_indices = @transform_6, window_bounds = array<i64: 128, 128>}, {pipeline_mode = #tpu.pipeline_mode<synchronous>, transform_indices = @transform_7, window_bounds = array<i64: 1, 128>}, {pipeline_mode = #tpu.pipeline_mode<synchronous>, transform_indices = @transform_8, window_bounds = array<i64: 128, 256>}, {pipeline_mode = #tpu.pipeline_mode<synchronous>, transform_indices = @transform_9, window_bounds = array<i64: 1, 256>}, {transform_indices = @transform_10, window_bounds = array<i64: 8, 128>}, {transform_indices = @transform_11, window_bounds = array<i64: 8, 128>}, {transform_indices = @transform_12, window_bounds = array<i64: 8, 256>}]} {
    %c0 = arith.constant 0 : index
    %c0_0 = arith.constant 0 : index
    %0 = vector.load %arg1[%c0, %c0_0] : memref<8x256xbf16, #tpu.memory_space<vmem>>, vector<8x256xbf16>
    %c0_1 = arith.constant 0 : index
    %c0_2 = arith.constant 0 : index
    %1 = vector.load %arg3[%c0_1, %c0_2] : memref<256x128xbf16, #tpu.memory_space<vmem>>, vector<256x128xbf16>
    %cst = arith.constant dense<0.000000e+00> : vector<8x128xf32>
    %2 = tpu.matmul %0, %1, %cst {dimension_numbers = #tpu.dot_dimension_numbers<[1], [0], [0], [1], [0, 0, 1, 1], [], []>} : vector<8x256xbf16>, vector<256x128xbf16>, vector<8x128xf32> -> vector<8x128xf32>
    %c0_3 = arith.constant 0 : index
    %c0_4 = arith.constant 0 : index
    %3 = vector.load %arg4[%c0_3, %c0_4] : memref<1x128xf32, #tpu.memory_space<vmem>>, vector<1x128xf32>
    %4 = vector.broadcast %3 : vector<1x128xf32> to vector<8x128xf32>
    %5 = arith.addf %2, %4 : vector<8x128xf32>
    %cst_5 = arith.constant 0.000000e+00 : f32
    %6 = vector.broadcast %cst_5 : f32 to vector<8x128xf32>
    %7 = arith.maximumf %5, %6 : vector<8x128xf32>
    %8 = arith.truncf %7 : vector<8x128xf32> to vector<8x128xbf16>
    %c0_6 = arith.constant 0 : index
    %c0_7 = arith.constant 0 : index
    %9 = vector.load %arg5[%c0_6, %c0_7] : memref<128x256xbf16, #tpu.memory_space<vmem>>, vector<128x256xbf16>
    %cst_8 = arith.constant dense<0.000000e+00> : vector<8x256xf32>
    %10 = tpu.matmul %8, %9, %cst_8 {dimension_numbers = #tpu.dot_dimension_numbers<[1], [0], [0], [1], [0, 0, 1, 1], [], []>} : vector<8x128xbf16>, vector<128x256xbf16>, vector<8x256xf32> -> vector<8x256xf32>
    %c0_9 = arith.constant 0 : index
    %c0_10 = arith.constant 0 : index
    %11 = vector.load %arg6[%c0_9, %c0_10] : memref<1x256xf32, #tpu.memory_space<vmem>>, vector<1x256xf32>
    %12 = vector.broadcast %11 : vector<1x256xf32> to vector<8x256xf32>
    %13 = arith.addf %10, %12 : vector<8x256xf32>
    %14 = vector.extract_strided_slice %13 {offsets = [0, 0], sizes = [8, 128], strides = [1, 1]} : vector<8x256xf32> to vector<8x128xf32>
    %15 = vector.extract_strided_slice %13 {offsets = [0, 128], sizes = [8, 128], strides = [1, 1]} : vector<8x256xf32> to vector<8x128xf32>
    %c0_11 = arith.constant 0 : index
    %c0_12 = arith.constant 0 : index
    %16 = vector.load %arg2[%c0_11, %c0_12] : memref<8x128xf32, #tpu.memory_space<vmem>>, vector<8x128xf32>
    %cst_13 = arith.constant 5.000000e-01 : f32
    %17 = vector.broadcast %cst_13 : f32 to vector<8x128xf32>
    %18 = arith.mulf %15, %17 : vector<8x128xf32>
    %19 = math.exp %18 : vector<8x128xf32>
    %20 = arith.mulf %16, %19 : vector<8x128xf32>
    %21 = arith.addf %20, %14 : vector<8x128xf32>
    %22 = arith.truncf %21 : vector<8x128xf32> to vector<8x128xbf16>
    %c0_14 = arith.constant 0 : index
    %c0_15 = arith.constant 0 : index
    %23 = vector.load %arg7[%c0_14, %c0_15] : memref<128x128xbf16, #tpu.memory_space<vmem>>, vector<128x128xbf16>
    %cst_16 = arith.constant dense<0.000000e+00> : vector<8x128xf32>
    %24 = tpu.matmul %22, %23, %cst_16 {dimension_numbers = #tpu.dot_dimension_numbers<[1], [0], [0], [1], [0, 0, 1, 1], [], []>} : vector<8x128xbf16>, vector<128x128xbf16>, vector<8x128xf32> -> vector<8x128xf32>
    %c0_17 = arith.constant 0 : index
    %c0_18 = arith.constant 0 : index
    %25 = vector.load %arg8[%c0_17, %c0_18] : memref<1x128xf32, #tpu.memory_space<vmem>>, vector<1x128xf32>
    %26 = vector.broadcast %25 : vector<1x128xf32> to vector<8x128xf32>
    %27 = arith.addf %24, %26 : vector<8x128xf32>
    %cst_19 = arith.constant 0.000000e+00 : f32
    %28 = vector.broadcast %cst_19 : f32 to vector<8x128xf32>
    %29 = arith.maximumf %27, %28 : vector<8x128xf32>
    %30 = arith.truncf %29 : vector<8x128xf32> to vector<8x128xbf16>
    %c0_20 = arith.constant 0 : index
    %c0_21 = arith.constant 0 : index
    %31 = vector.load %arg9[%c0_20, %c0_21] : memref<128x256xbf16, #tpu.memory_space<vmem>>, vector<128x256xbf16>
    %cst_22 = arith.constant dense<0.000000e+00> : vector<8x256xf32>
    %32 = tpu.matmul %30, %31, %cst_22 {dimension_numbers = #tpu.dot_dimension_numbers<[1], [0], [0], [1], [0, 0, 1, 1], [], []>} : vector<8x128xbf16>, vector<128x256xbf16>, vector<8x256xf32> -> vector<8x256xf32>
    %c0_23 = arith.constant 0 : index
    %c0_24 = arith.constant 0 : index
    %33 = vector.load %arg10[%c0_23, %c0_24] : memref<1x256xf32, #tpu.memory_space<vmem>>, vector<1x256xf32>
    %34 = vector.broadcast %33 : vector<1x256xf32> to vector<8x256xf32>
    %35 = arith.addf %32, %34 : vector<8x256xf32>
    %36 = arith.negf %35 : vector<8x256xf32>
    %37 = math.exp %36 : vector<8x256xf32>
    %cst_25 = arith.constant 1.000000e+00 : f32
    %38 = vector.broadcast %cst_25 : f32 to vector<8x256xf32>
    %39 = arith.addf %38, %37 : vector<8x256xf32>
    %40 = arith.divf %38, %39 : vector<8x256xf32>
    %c0_26 = arith.constant 0 : index
    %c0_27 = arith.constant 0 : index
    %41 = vector.load %arg11[%c0_26, %c0_27] : memref<8x128xf32, #tpu.memory_space<vmem>>, vector<8x128xf32>
    tpu.vector_store %arg11[%c0_26, %c0_27], %14 {strides = array<i32>} : memref<8x128xf32, #tpu.memory_space<vmem>>, vector<8x128xf32>,
    %c0_28 = arith.constant 0 : index
    %c0_29 = arith.constant 0 : index
    %42 = vector.load %arg12[%c0_28, %c0_29] : memref<8x128xf32, #tpu.memory_space<vmem>>, vector<8x128xf32>
    tpu.vector_store %arg12[%c0_28, %c0_29], %15 {strides = array<i32>} : memref<8x128xf32, #tpu.memory_space<vmem>>, vector<8x128xf32>,
    %c0_30 = arith.constant 0 : index
    %c0_31 = arith.constant 0 : index
    %43 = vector.load %arg13[%c0_30, %c0_31] : memref<8x256xf32, #tpu.memory_space<vmem>>, vector<8x256xf32>
    tpu.vector_store %arg13[%c0_30, %c0_31], %40 {strides = array<i32>} : memref<8x256xf32, #tpu.memory_space<vmem>>, vector<8x256xf32>,
    return
  }
  func.func @transform_0(%arg0: i32) -> (i32, i32) {
    %c0_i32 = arith.constant 0 : i32
    %c0_i32_0 = arith.constant 0 : i32
    return %arg0, %c0_i32 : i32, i32
  }
  func.func @transform_1(%arg0: i32) -> (i32, i32) {
    %c0_i32 = arith.constant 0 : i32
    %c0_i32_0 = arith.constant 0 : i32
    return %arg0, %c0_i32 : i32, i32
  }
  func.func @transform_2(%arg0: i32) -> (i32, i32) {
    %c0_i32 = arith.constant 0 : i32
    %c0_i32_0 = arith.constant 0 : i32
    %c0_i32_1 = arith.constant 0 : i32
    return %c0_i32, %c0_i32_0 : i32, i32
  }
  func.func @transform_3(%arg0: i32) -> (i32, i32) {
    %c0_i32 = arith.constant 0 : i32
    %c0_i32_0 = arith.constant 0 : i32
    %c0_i32_1 = arith.constant 0 : i32
    return %c0_i32, %c0_i32_0 : i32, i32
  }
  func.func @transform_4(%arg0: i32) -> (i32, i32) {
    %c0_i32 = arith.constant 0 : i32
    %c0_i32_0 = arith.constant 0 : i32
    %c0_i32_1 = arith.constant 0 : i32
    return %c0_i32, %c0_i32_0 : i32, i32
  }
  func.func @transform_5(%arg0: i32) -> (i32, i32) {
    %c0_i32 = arith.constant 0 : i32
    %c0_i32_0 = arith.constant 0 : i32
    %c0_i32_1 = arith.constant 0 : i32
    return %c0_i32, %c0_i32_0 : i32, i32
  }
  func.func @transform_6(%arg0: i32) -> (i32, i32) {
    %c0_i32 = arith.constant 0 : i32
    %c0_i32_0 = arith.constant 0 : i32
    %c0_i32_1 = arith.constant 0 : i32
    return %c0_i32, %c0_i32_0 : i32, i32
  }
  func.func @transform_7(%arg0: i32) -> (i32, i32) {
    %c0_i32 = arith.constant 0 : i32
    %c0_i32_0 = arith.constant 0 : i32
    %c0_i32_1 = arith.constant 0 : i32
    return %c0_i32, %c0_i32_0 : i32, i32
  }
  func.func @transform_8(%arg0: i32) -> (i32, i32) {
    %c0_i32 = arith.constant 0 : i32
    %c0_i32_0 = arith.constant 0 : i32
    %c0_i32_1 = arith.constant 0 : i32
    return %c0_i32, %c0_i32_0 : i32, i32
  }
  func.func @transform_9(%arg0: i32) -> (i32, i32) {
    %c0_i32 = arith.constant 0 : i32
    %c0_i32_0 = arith.constant 0 : i32
    %c0_i32_1 = arith.constant 0 : i32
    return %c0_i32, %c0_i32_0 : i32, i32
  }
  func.func @transform_10(%arg0: i32) -> (i32, i32) {
    %c0_i32 = arith.constant 0 : i32
    %c0_i32_0 = arith.constant 0 : i32
    return %arg0, %c0_i32 : i32, i32
  }
  func.func @transform_11(%arg0: i32) -> (i32, i32) {
    %c0_i32 = arith.constant 0 : i32
    %c0_i32_0 = arith.constant 0 : i32
    return %arg0, %c0_i32 : i32, i32
  }
  func.func @transform_12(%arg0: i32) -> (i32, i32) {
    %c0_i32 = arith.constant 0 : i32
    %c0_i32_0 = arith.constant 0 : i32
    return %arg0, %c0_i32 : i32, i32
  }
}

</mosaic_0001>

<bundles_post_ra>
// kernel: tpu_custom_call.1
= control target key start
LH: loop header
LB: loop body
LE: loop exit
PB: predicated region body
PF: predicated region fallthrough
CT: control target
= control target key end

     0   :  { %s2568_s0 = inlined_call_operand.hbm [shape: bf16[32,256], index: 0, kind: input, shape index: {}]   ;;  %s2569_s1 = inlined_call_operand.hbm [shape: f32[32,128], index: 1, kind: input, shape index: {}]   ;;  %s2570_s2 = inlined_call_operand.hbm [shape: bf16[256,128], index: 2, kind: input, shape index: {}]   ;;  %s2571_s3 = inlined_call_operand.vmem [shape: f32[1,128], index: 3, kind: input, shape index: {}]   ;;  %s2572_s4 = inlined_call_operand.hbm [shape: bf16[128,256], index: 4, kind: input, shape index: {}]   ;;  %s2573_s5 = inlined_call_operand.vmem [shape: f32[1,256], index: 5, kind: input, shape index: {}]   ;;  %s2574_s6 = inlined_call_operand.hbm [shape: bf16[128,128], index: 6, kind: input, shape index: {}]   ;;  %s2575_s7 = inlined_call_operand.vmem [shape: f32[1,128], index: 7, kind: input, shape index: {}]   ;;  %s2576_s8 = inlined_call_operand.hbm [shape: bf16[128,256], index: 8, kind: input, shape index: {}]   ;;  %s2577_s9 = inlined_call_operand.vmem [shape: f32[1,256], index: 9, kind: input, shape index: {}]   ;;  %s2578_s10 = inlined_call_operand.hbm [shape: f32[32,128], index: 10, kind: output, shape index: {0}]   ;;  %s2579_s11 = inlined_call_operand.hbm [shape: f32[32,128], index: 11, kind: output, shape index: {1}]   ;;  %s2580_s12 = inlined_call_operand.hbm [shape: f32[32,256], index: 12, kind: output, shape index: {2}]  }
   0x1   :  { %2592 = sst [smem:[#allocation25_spill]] %s2570_s2 }
   0x2   :  { %2593 = sst [smem:[#allocation26_spill]] %s2572_s4 }
   0x3   :  { %2594 = sst [smem:[#allocation27_spill]] %s2574_s6 }
   0x4   :  { %2595 = sst [smem:[#allocation28_spill]] %s2576_s8 }
   0x5   :  { %2596 = sst [smem:[#allocation29_spill]] %s2577_s9 }
   0x6   :  { %2597 = sst [smem:[#allocation30_spill]] %s2578_s10 }
   0x7   :  { %2598 = sst [smem:[#allocation31_spill]] %s2579_s11 }
   0x8   :  { %2599 = sst [smem:[#allocation32_spill]] %s2580_s12 }
   0x9   :  { %18 = vsyncpa [#allocation3], 0 }
   0xa   :  { %20 = vsyncpa [#allocation3 + $0x1], 0 }
   0xb   :  { %21 = vsyncpa [#allocation6], 0 }
   0xc   :  { %23 = vsyncpa [#allocation6 + $0x1], 0 }
   0xd   :  { %24 = vsyncpa [#allocation9], 0 }
   0xe   :  { %25 = vsyncpa [#allocation12], 0 }
   0xf   :  { %26 = vsyncpa [#allocation4], 0 }
  0x10   :  { %28 = vsyncpa [#allocation4 + $0x1], 0 }
  0x11   :  { %29 = vsyncpa [#allocation15], 0 }
  0x12   :  { %31 = vsyncpa [#allocation15 + $0x1], 0  ;;  %s2142_s21 = smov 0   ;;  %s2144_s22 = smov 0  }
  0x13   :  { %s2146_s23 = smov 0   ;;  %s2148_s24 = smov 0  }
  0x14 LB: > { %s2061_s25 = smov [#allocation7]   ;;  %s2163_s27 = sadd.s32 4294967295, %s2059_s24   ;;  %s2059_s24 = sphi %s2148_s24, %s2636_s24   ;;  %s2055_s23 = sphi %s2146_s23, %s2635_s23   ;;  %s2051_s22 = sphi %s2144_s22, %s2634_s22   ;;  %s2047_s21 = sphi %s2142_s21, %s2633_s21  }
  0x15   : > { %s352_s26 = sshll.u32 %s2061_s25, 4  ;;  %p1407_p0 = scmp.ge.s32.totalorder %s2059_s24, 1  ;;  %s2168_s26 = int_to_ptr.vmem [resolvable:$true] %s352_s26 }
  0x16   : > { %p2585_p1 = scmp.eq.s32.totalorder %s2163_s27, 0  ;;  %p340_p2 = scmp.lt.s32.totalorder %s2059_s24, 5 }
  0x17   : > { %s2062_s29 = smov [#allocation8]   ;;  %s2063_s14 = smov [#allocation10]  }
  0x18   : > { %p2170_p3 = pnand %p1407_p0, %p340_p2  ;;  %s368_s30 = sshll.u32 %s2062_s29, 4  ;;  %s2182_s30 = int_to_ptr.vmem [resolvable:$true] %s368_s30 }
  0x19   : > { %s2184_s15 = sshll.u32 %s2063_s14, 4  ;;  %s2602_s2 = sld [smem:[#allocation25_spill]]  ;;  %s385_s15 = int_to_ptr.vmem [resolvable:$true] %s2184_s15 }
  0x1a   : > { %s2600_s28 = scalar_select %p2170_p3, 1, 0 }
  0x1b   : > { %p1578_p4 = pneg %p2170_p3 }
  0x1d   : > { %p2178_p5 = pnand %p1578_p4, %p2585_p1 }
  0x1f   : > { %s1745_s18 = scalar_lea.hbm %s2602_s2, 2048  ;;  %p2194_p7 = pneg %p2178_p5 }
  0x20   : > { %p1746_p6 = scmp.ne.s32.totalorder %s2602_s2, %s1745_s18  ;;  %p1752_p10 = scmp.lt.u32.totalorder %s1745_s18, %s2602_s2 }
  0x22   : > { %p1748_p8 = pnand %p2194_p7, %p1746_p6 }
  0x24   : > { %p1749_p9 = pneg %p1748_p8 }
  0x26   : > { %p1754_p11 = pnand %p1752_p10, %p1749_p9 }
  0x28   : > { %1757 = shalt.err (!%p1754_p11)
}
  0x29   : > { %s1758_s16 = scalar_lea.vmem %s2168_s26, 2048  ;;  %p1766_p2 = scmp.lt.s32.totalorder %s2168_s26, %s2168_s26 }
  0x2a   : > { %p1759_p12 = scmp.ne.s32.totalorder %s2168_s26, %s1758_s16  ;;  %p1767_p4 = scmp.lt.s32.totalorder %s1758_s16, %s1758_s16 }
  0x2c   : > { %p1761_p13 = pnand %p1759_p12, %p2194_p7  ;;  %p1768_p6 = por %p1767_p4, %p1766_p2 }
  0x2e   : > { %p1762_p0 = pneg %p1761_p13 }
  0x30   : > { %p1769_p8 = pnand %p1768_p6, %p1762_p0 }
  0x32   : > { %1772 = shalt.err (!%p1769_p8)
}
  0x33   : > { %s2584_s17 = smov 64   ;;  %s2065_s18 = smov 4  }
  0x34   : > { %1581 = dma.hbm_to_vmem [thread:$0]  (!%p2178_p5), %s2602_s2, 2048, %s2168_s26, [#allocation6], %s2584_s17, %s2584_s17, %s2065_s18  }
  0x35   : > { %s2604_s4 = sld [smem:[#allocation26_spill]] }
  0x3b   : > { %s1773_s16 = scalar_lea.hbm %s2604_s4, 2048 }
  0x3c   : > { %p1774_p9 = scmp.ne.s32.totalorder %s2604_s4, %s1773_s16  ;;  %p1780_p12 = scmp.lt.u32.totalorder %s1773_s16, %s2604_s4 }
  0x3e   : > { %p1776_p10 = pnand %p1774_p9, %p2194_p7 }
  0x40   : > { %p1777_p11 = pneg %p1776_p10 }
  0x42   : > { %p1782_p13 = pnand %p1780_p12, %p1777_p11 }
  0x44   : > { %1785 = shalt.err (!%p1782_p13)
}
  0x45   : > { %s1786_s26 = scalar_lea.vmem %s2182_s30, 2048  ;;  %p1794_p6 = scmp.lt.s32.totalorder %s2182_s30, %s2182_s30 }
  0x46   : > { %p1787_p0 = scmp.ne.s32.totalorder %s2182_s30, %s1786_s26  ;;  %p1795_p8 = scmp.lt.s32.totalorder %s1786_s26, %s1786_s26 }
  0x48   : > { %p1789_p2 = pnand %p1787_p0, %p2194_p7  ;;  %p1796_p9 = por %p1795_p8, %p1794_p6 }
  0x4a   : > { %p1790_p4 = pneg %p1789_p2 }
  0x4c   : > { %p1797_p10 = pnand %p1796_p9, %p1790_p4 }
  0x4e   : > { %1800 = shalt.err (!%p1797_p10)
}
  0x4f   : > { %s2587_s9 = smov 128   ;;  %s2588_s10 = smov 8  }
  0x50   : > { %1584 = dma.hbm_to_vmem [thread:$0]  (!%p2178_p5), %s2604_s4, 2048, %s2182_s30, [#allocation9], %s2587_s9, %s2587_s9, %s2588_s10  }
  0x51   : > { %s2605_s6 = sld [smem:[#allocation27_spill]] }
  0x57   : > { %s1801_s29 = scalar_lea.hbm %s2605_s6, 1024 }
  0x58   : > { %p1802_p11 = scmp.ne.s32.totalorder %s2605_s6, %s1801_s29  ;;  %p1808_p0 = scmp.lt.u32.totalorder %s1801_s29, %s2605_s6 }
  0x5a   : > { %p1804_p12 = pnand %p1802_p11, %p2194_p7 }
  0x5c   : > { %p1805_p13 = pneg %p1804_p12 }
  0x5e   : > { %p1810_p2 = pnand %p1808_p0, %p1805_p13 }
  0x60   : > { %1813 = shalt.err (!%p1810_p2)
}
  0x61   : > { %s1814_s11 = scalar_lea.vmem %s385_s15, 1024  ;;  %p1822_p9 = scmp.lt.s32.totalorder %s385_s15, %s385_s15 }
  0x62   : > { %p1815_p4 = scmp.ne.s32.totalorder %s385_s15, %s1814_s11  ;;  %p1823_p10 = scmp.lt.s32.totalorder %s1814_s11, %s1814_s11 }
  0x64   : > { %p1817_p6 = pnand %p1815_p4, %p2194_p7  ;;  %p1824_p1 = por %p1823_p10, %p1822_p9 }
  0x66   : > { %p1818_p8 = pneg %p1817_p6 }
  0x68   : > { %p1825_p3 = pnand %p1824_p1, %p1818_p8 }
  0x6a   : > { %1828 = shalt.err (!%p1825_p3)
}
  0x6b   : > { %s2606_s30 = smov 64   ;;  %s2068_s19 = smov [#allocation11]  }
  0x6c   : > { %1587 = dma.hbm_to_vmem [thread:$0]  (!%p2178_p5), %s2605_s6, 1024, %s385_s15, [#allocation9], %s2606_s30, %s2606_s30, %s2065_s18  }
  0x6d   : > { %s400_s20 = sshll.u32 %s2068_s19, 4  ;;  %s2607_s8 = sld [smem:[#allocation28_spill]]  ;;  %s401_s20 = int_to_ptr.vmem [resolvable:$true] %s400_s20 }
  0x73   : > { %s1829_s16 = scalar_lea.hbm %s2607_s8, 2048 }
  0x74   : > { %p1830_p1 = scmp.ne.s32.totalorder %s2607_s8, %s1829_s16  ;;  %p1836_p12 = scmp.lt.u32.totalorder %s1829_s16, %s2607_s8 }
  0x76   : > { %p1832_p3 = pnand %p1830_p1, %p2194_p7 }
  0x78   : > { %p1833_p11 = pneg %p1832_p3 }
  0x7a   : > { %p1838_p13 = pnand %p1836_p12, %p1833_p11 }
  0x7c   : > { %1841 = shalt.err (!%p1838_p13)
}
  0x7d   : > { %s1842_s15 = scalar_lea.vmem %s401_s20, 2048  ;;  %p1850_p6 = scmp.lt.s32.totalorder %s401_s20, %s401_s20 }
  0x7e   : > { %p1843_p0 = scmp.ne.s32.totalorder %s401_s20, %s1842_s15  ;;  %p1851_p8 = scmp.lt.s32.totalorder %s1842_s15, %s1842_s15 }
  0x80   : > { %p1845_p2 = pnand %p1843_p0, %p2194_p7  ;;  %p1852_p9 = por %p1851_p8, %p1850_p6 }
  0x82   : > { %p1846_p4 = pneg %p1845_p2 }
  0x84   : > { %p1853_p10 = pnand %p1852_p9, %p1846_p4 }
  0x86   : > { %1856 = shalt.err (!%p1853_p10)
}
  0x87   : > { %s2608_s18 = smov 8   ;;  %s2609_s30 = smov 128  }
  0x88   : > { %1590 = dma.hbm_to_vmem [thread:$0]  (!%p2178_p5), %s2607_s8, 2048, %s401_s20, [#allocation12], %s2609_s30, %s2609_s30, %s2608_s18  }
  0x89   : > { %s2589_s13 = sadd.s32 4294967294, %s2059_s24   ;;  %s2289_s25 = sadd.s32 1, %s2059_s24  }
  0x8a   : > { %s41_s17 = ssub.s32 %s2059_s24, %s2289_s25  ;;  %s44_s12 = sadd.s32 1, %s2055_s23 }
  0x8b   : > { %p42_p7 = scmp.eq.s32.totalorder %s41_s17, 0  ;;  %p51_p1 = scmp.ne.s32.totalorder %s2055_s23, %s2051_s22 }
  0x8c   : > { %p52_p3 = scmp.eq.s32.totalorder %s2059_s24, 0  ;;  %p57_p11 = scmp.ne.s32.totalorder %s2051_s22, %s2047_s21 }
  0x8d   : > { %s2300_s19 = scalar_select %p42_p7, %s2055_s23, %s44_s12  }
  0x8e   : > { %p2302_p12 = por %p52_p3, %p51_p1  ;;  %p2612_p13 = scmp.eq.s32.totalorder %s2163_s27, 0 }
  0x8f   : > { %2610 = sst [smem:[#allocation24_spill]] %s2300_s19  ;;  %p275_p0 = scmp.eq.s32.totalorder %s2163_s27, 3 }
  0x90   : > { %p2308_p5 = por %p2612_p13, %p57_p11  ;;  %p281_p2 = scmp.eq.s32.totalorder %s2589_s13, 3 }
  0x91   : > { %p1612_p4 = scmp.lt.s32.totalorder %s2059_s24, 4  ;;  %s417_s14 = sand.u32 1, %s2055_s23  }
  0x92   : > { %s2613_s20 = scalar_select %p2308_p5, 1, 0 }
  0x93   : > { %p2317_p6 = por %p275_p0, %p51_p1  ;;  %p2321_p8 = por %p281_p2, %p57_p11 }
  0x94   : > { %s2325_s11 = sshll.u32 %s417_s14, 3  ;;  %s1499_s15 = sshll.u32 %s2059_s24, 7 }
  0x95   : > { %s2614_s16 = scalar_select %p2317_p6, 1, 0 }
  0x96   : > { %s2615_s26 = scalar_select %p2321_p8, 1, 0 }
  0x97   : > { %s2331_s9 = scalar_lea.hbm %s2568_s0, %s1499_s15  ;;  %s421_s10 = scalar_lea.vmem [#allocation2], %s2325_s11 }
  0x98   : > { %s429_s17 = sshll.u32 %s421_s10, 4  ;;  %p2338_p9 = pnand %p1612_p4, %p2302_p12  ;;  %s2334_s17 = int_to_ptr.vmem [resolvable:$true] %s429_s17 }
  0x99   : > { %s2345_s18 = scalar_lea.hbm %s2569_s1, %s1499_s15  ;;  %s436_s30 = sand.u32 1, %s2059_s24  }
  0x9a   : > { %s418_s4 = scalar_lea.sflag [#allocation3], %s417_s14  ;;  %s1857_s6 = scalar_lea.hbm %s2331_s9, 128 }
  0x9b   : > { %p1858_p10 = scmp.ne.s32.totalorder %s2331_s9, %s1857_s6  ;;  %p1859_p7 = pneg %p2338_p9 }
  0x9c   : > { %s1862_s8 = scalar_lea.hbm %s2568_s0, 512  ;;  %p1863_p11 = scmp.lt.u32.totalorder %s2331_s9, %s2568_s0 }
  0x9d   : > { %p1860_p1 = pnand %p1859_p7, %p1858_p10  ;;  %p1864_p12 = scmp.lt.u32.totalorder %s1862_s8, %s1857_s6 }
  0x9e   : > { %p1866_p0 = scmp.lt.u32.totalorder %s1857_s6, %s2331_s9 }
  0x9f   : > { %p1861_p3 = pneg %p1860_p1  ;;  %p1865_p13 = por %p1864_p12, %p1863_p11 }
  0xa1   : > { %p1867_p2 = por %p1866_p0, %p1865_p13 }
  0xa3   : > { %p1868_p4 = pnand %p1867_p2, %p1861_p3 }
  0xa5   : > { %1871 = shalt.err (!%p1868_p4)
}
  0xa6   : > { %s1872_s13 = scalar_lea.vmem %s2334_s17, 128  ;;  %s2069_s14 = smov [#allocation2]  }
  0xa7   : > { %p1873_p10 = scmp.ne.s32.totalorder %s2334_s17, %s1872_s13  ;;  %s1877_s15 = sshll.u32 %s2069_s14, 4  ;;  %s1878_s15 = int_to_ptr.vmem [resolvable:$false] %s1877_s15 }
  0xa8   : > { %s1879_s19 = scalar_lea.vmem %s1878_s15, 256  ;;  %p1880_p6 = scmp.lt.s32.totalorder %s2334_s17, %s1878_s15 }
  0xa9   : > { %p1875_p1 = pnand %p1873_p10, %p1859_p7  ;;  %p1881_p11 = scmp.lt.s32.totalorder %s1879_s19, %s1872_s13 }
  0xab   : > { %p1876_p8 = pneg %p1875_p1  ;;  %p1882_p12 = por %p1881_p11, %p1880_p6 }
  0xad   : > { %p1883_p13 = pnand %p1882_p12, %p1876_p8 }
  0xaf   : > { %1886 = shalt.err (!%p1883_p13)
}
  0xb0   : > { %1594 = dma.hbm_to_vmem [thread:$0]  (!%p2338_p9), %s2331_s9, 128, %s2334_s17, %s418_s4  }
  0xb1   : > { %s440_s6 = scalar_lea.vmem [#allocation5], %s2325_s11  ;;  %s437_s29 = scalar_lea.sflag [#allocation6], %s436_s30 }
  0xb2   : > { %s447_s8 = sshll.u32 %s440_s6, 4  ;;  %s1887_s10 = scalar_lea.hbm %s2345_s18, 128  ;;  %s448_s8 = int_to_ptr.vmem [resolvable:$true] %s447_s8 }
  0xb3   : > { %p1888_p6 = scmp.ne.s32.totalorder %s2345_s18, %s1887_s10  ;;  %s1892_s14 = scalar_lea.hbm %s2569_s1, 512 }
  0xb4   : > { %p1893_p0 = scmp.lt.u32.totalorder %s2345_s18, %s2569_s1  ;;  %p1894_p2 = scmp.lt.u32.totalorder %s1892_s14, %s1887_s10 }
  0xb5   : > { %p1890_p8 = pnand %p1888_p6, %p1859_p7  ;;  %p1896_p10 = scmp.lt.u32.totalorder %s1887_s10, %s2345_s18 }
  0xb6   : > { %p1895_p4 = por %p1894_p2, %p1893_p0 }
  0xb7   : > { %p1891_p3 = pneg %p1890_p8 }
  0xb8   : > { %p1897_p1 = por %p1896_p10, %p1895_p4 }
  0xba   : > { %p1898_p11 = pnand %p1897_p1, %p1891_p3 }
  0xbc   : > { %1901 = shalt.err (!%p1898_p11)
}
  0xbd   : > { %s1902_s4 = scalar_lea.vmem %s448_s8, 128  ;;  %s2070_s11 = smov [#allocation5]  }
  0xbe   : > { %p1903_p12 = scmp.ne.s32.totalorder %s448_s8, %s1902_s4  ;;  %s1907_s9 = sshll.u32 %s2070_s11, 4  ;;  %s1908_s9 = int_to_ptr.vmem [resolvable:$false] %s1907_s9 }
  0xbf   : > { %s1909_s17 = scalar_lea.vmem %s1908_s9, 256  ;;  %p1910_p8 = scmp.lt.s32.totalorder %s448_s8, %s1908_s9 }
  0xc0   : > { %p1905_p13 = pnand %p1903_p12, %p1859_p7  ;;  %p1911_p5 = scmp.lt.s32.totalorder %s1909_s17, %s1902_s4 }
  0xc2   : > { %p1906_p6 = pneg %p1905_p13  ;;  %p1912_p0 = por %p1911_p5, %p1910_p8 }
  0xc4   : > { %p1913_p2 = pnand %p1912_p0, %p1906_p6 }
  0xc6   : > { %1916 = shalt.err (!%p1913_p2)
}
  0xc7   : > { %1597 = dma.hbm_to_vmem [thread:$0]  (!%p2338_p9), %s2345_s18, 128, %s448_s8, %s437_s29  }
  0xc8   : > { %p2617_p3 = scmp.ne.s32.totalorder %s2600_s28, 0 }
  0xc9   : > { %s2398_s30 = sand.u32 (!%p2617_p3), 1, %s2051_s22   ;;  %p2618_p5 = scmp.ne.s32.totalorder (!%p2617_p3), %s2613_s20, 0 }
  0xca   : > { %456 = sbr.rel (%p2617_p3) target bundleno = 1186 (0x4a2), region = 60  ;;  %s2401_s6 = sshll.u32 (!%p2617_p3), %s2398_s30, 3 }
  0xcb   : > { %s459_s10 = scalar_lea.sflag (!%p2617_p3), [#allocation3], %s2398_s30  ;;  %s462_s2 = scalar_lea.vmem (!%p2617_p3), [#allocation2], %s2401_s6 }
  0xd1   : > { %2018 = dma.done.wait (%p2618_p5), %s459_s10, 128  }
  0xd2   : > { %2020 = vsyncadd (%p2618_p5), %s459_s10, 4294967168  ;;  %s467_s28 = sand.u32 1, %s2163_s27   ;;  %s471_s18 = scalar_lea.vmem [#allocation5], %s2401_s6 }
  0xd3   : > { %s468_s12 = scalar_lea.sflag [#allocation6], %s467_s28 }
  0xd4   : > { %2022 = dma.done.wait (%p2618_p5), %s468_s12, 128  }
  0xd5   : > { %2024 = vsyncadd (%p2618_p5), %s468_s12, 4294967168  ;;  %p2619_p9 = scmp.eq.s32.totalorder %s2163_s27, 0 }
  0xd7   : > { %2026 = dma.done.wait (%p2619_p9), [#allocation6], 2048   ;;  %p2620_p7 = pmov %p2619_p9 }
  0xd9   : > { %2028 = vsyncadd (%p2620_p7), [#allocation6], 4294965248  ;;  %p2621_p4 = pmov %p2620_p7 }
  0xdb   : > { %2030 = dma.done.wait (%p2621_p4), [#allocation9], 3072   ;;  %p2622_p10 = pmov %p2621_p4 }
  0xdc   : > { %p2623_p1 = pmov %p2621_p4 }
  0xdd   : > { %2032 = vsyncadd (%p2622_p10), [#allocation9], 4294964224 }
  0xde   : > { %2034 = dma.done.wait (%p2623_p1), [#allocation12], 2048   ;;  %p2624_p11 = pmov %p2623_p1 }
  0xdf   : > { %v1661_v0 = vld [vmem:[#allocation7 + $0x40] sm:$0xff]   ;;  %v1663_v2 = vld [vmem:[#allocation7 + $0x48] sm:$0xff]   ;;  %v1665_v4 = vld [vmem:[#allocation7 + $0x50] sm:$0xff]   ;;  %v2071_v35 = vmov 0   ;;  %v2072_v37 = vmov 0.0   ;;  %vm2073_vm0 = vmmov 0  }
  0xe0   : > { %2036 = vsyncadd (%p2624_p11), [#allocation12], 4294965248  ;;  %v1662_v1 = vld [vmem:[#allocation7] sm:$0xff]   ;;  %1501 = vmatprep.subr.bf16.mxu0 %v1661_v0  ;;  %v1664_v3 = vld [vmem:[#allocation7 + $0x8] sm:$0xff]   ;;  %869 = vmatprep.mubr.bf16.mxu1 %v2071_v35  ;;  %s528_s14 = scalar_lea.vmem [#allocation13], %s2401_s6  ;;  %s535_s15 = scalar_lea.vmem [#allocation14], %s2401_s6 }
  0xe1   : > { %1502 = vmatpush3.bf16.msra.mxu0 %v1662_v1  ;;  %v1666_v5 = vld [vmem:[#allocation7 + $0x10] sm:$0xff]   ;;  %v1667_v6 = vld [vmem:[#allocation7 + $0x58] sm:$0xff]   ;;  %v1669_v8 = vld [vmem:[#allocation7 + $0x60] sm:$0xff]   ;;  %s1493_s11 = sshll.u32 %s2163_s27, 7  ;;  %s2625_s10 = sld [smem:[#allocation31_spill]] }
  0xe2   : > { %1503 = vmatprep.subr.bf16.mxu0 %v1663_v2  ;;  %v1668_v7 = vld [vmem:[#allocation7 + $0x18] sm:$0xff]   ;;  %v1670_v9 = vld [vmem:[#allocation7 + $0x20] sm:$0xff]   ;;  %v1671_v10 = vld [vmem:[#allocation7 + $0x68] sm:$0xff]   ;;  %s1200_s12 = sshll.u32 %s535_s15, 4  ;;  %p2626_p13 = scmp.ne.s32.totalorder %s2614_s16, 0  ;;  %s1201_s12 = int_to_ptr.vmem [resolvable:$true] %s1200_s12 }
  0xe3   : > { %v544_v11 = vld [vmem:[%s462_s2] sm:$0xff]  ;;  %v1682_v15 = vld [vmem:[#allocation8 + $0x14] ss:$8 sps:$4 sm:$0xff]   ;;  %v1684_v19 = vld [vmem:[#allocation8 + $0x10] ss:$8 sps:$4 sm:$0xff]   ;;  %s1917_s20 = scalar_lea.vmem %s1201_s12, 128 }
  0xe4   : > { %v1430_v12 = vcombine.high %v544_v11, %v544_v11  ;;  %v1679_v13 = vld [vmem:[#allocation8 + $0x4] ss:$8 sps:$4 sm:$0xff]   ;;  %v1681_v14 = vld [vmem:[#allocation8] ss:$8 sps:$4 sm:$0xff]   ;;  %v1673_v17 = vld [vmem:[#allocation7 + $0x70] sm:$0xff]   ;;  %v1429_v27 = vcombine.low %v544_v11, %v544_v11  ;;  %p1918_p12 = scmp.ne.s32.totalorder %s1201_s12, %s1917_s20  ;;  %s2074_s8 = smov [#allocation14]  }
  0xe5   : > { %1504 = vmatpush3.bf16.msra.mxu0 %v1664_v3  ;;  %v1672_v16 = vld [vmem:[#allocation7 + $0x28] sm:$0xff]   ;;  %837 = vmatprep.subr.bf16.mxu1 %v1679_v13  ;;  %v1674_v18 = vld [vmem:[#allocation7 + $0x30] sm:$0xff]   ;;  %v1675_v20 = vld [vmem:[#allocation7 + $0x78] sm:$0xff]   ;;  %s1921_s29 = sshll.u32 %s2074_s8, 4  ;;  %s1922_s29 = int_to_ptr.vmem [resolvable:$false] %s1921_s29 }
  0xe6   : > { %1505 = vmatprep.subr.bf16.mxu0 %v1665_v4  ;;  %719 = vmatprep.mubr.bf16.mxu0 %v1430_v12  ;;  %v1685_v21 = vld [vmem:[#allocation8 + $0x24] ss:$8 sps:$4 sm:$0xff]   ;;  %v1687_v22 = vld [vmem:[#allocation8 + $0x20] ss:$8 sps:$4 sm:$0xff]   ;;  %v1688_v23 = vld [vmem:[#allocation8 + $0x34] ss:$8 sps:$4 sm:$0xff]   ;;  %v747_v4 = vlaneseq  ;;  %p1919_p6 = pnand %p1918_p12, %p2626_p13  ;;  %p1924_p0 = scmp.lt.s32.totalorder %s1201_s12, %s1922_s29 }
  0xe7   : > { %838 = vmatpush1.bf16.msra.mxu1 %v1681_v14  ;;  %v1676_v24 = vld [vmem:[#allocation7 + $0x38] sm:$0xff]   ;;  %v1691_v26 = vld [vmem:[#allocation8 + $0x44] ss:$8 sps:$4 sm:$0xff]   ;;  %v1693_v28 = vld [vmem:[#allocation8 + $0x40] ss:$8 sps:$4 sm:$0xff]   ;;  %s2460_s2 = scalar_lea.hbm %s2625_s10, %s1493_s11  ;;  %s1923_s13 = scalar_lea.vmem %s1922_s29, 256 }
  0xe8   : > { %839 = vmatprep.subr.bf16.mxu1 %v1682_v15  ;;  %v1690_v25 = vld [vmem:[#allocation8 + $0x30] ss:$8 sps:$4 sm:$0xff]   ;;  %v1694_v29 = vld [vmem:[#allocation8 + $0x54] ss:$8 sps:$4 sm:$0xff]   ;;  %v1697_v31 = vld [vmem:[#allocation8 + $0x64] ss:$8 sps:$4 sm:$0xff]   ;;  %p1920_p8 = pneg %p1919_p6  ;;  %p1925_p2 = scmp.lt.s32.totalorder %s1923_s13, %s1917_s20 }
  0xe9   : > { %1506 = vmatpush3.bf16.msra.mxu0 %v1666_v5  ;;  %v1696_v30 = vld [vmem:[#allocation8 + $0x50] ss:$8 sps:$4 sm:$0xff]   ;;  %v1699_v32 = vld [vmem:[#allocation8 + $0x60] ss:$8 sps:$4 sm:$0xff]   ;;  %v1700_v33 = vld [vmem:[#allocation8 + $0x74] ss:$8 sps:$4 sm:$0xff]  }
  0xea   : > { %1507 = vmatprep.subr.bf16.mxu0 %v1667_v6  ;;  %v1702_v34 = vld [vmem:[#allocation8 + $0x70] ss:$8 sps:$4 sm:$0xff]   ;;  %v1703_v36 = vld [vmem:[#allocation10] sm:$0xff]   ;;  %v1704_v38 = vld [vmem:[#allocation10 + $0x8] sm:$0xff]   ;;  %v2434_v5 = vshrl.u32 %v747_v4, 7  ;;  %p1926_p3 = por %p1925_p2, %p1924_p0 }
  0xeb   : > { %840 = vmatpush1.bf16.msra.mxu1 %v1684_v19  ;;  %v1428_v40 = vld [vmem:[%s2571_s3] ss:$0 sm:$0xff]  ;;  %v1705_v48 = vld [vmem:[#allocation10 + $0x10] sm:$0xff]   ;;  %v1706_v49 = vld [vmem:[#allocation10 + $0x18] sm:$0xff]  }
  0xec   : > { %841 = vmatprep.subr.bf16.mxu1 %v1685_v21  ;;  %v1707_v50 = vld [vmem:[#allocation10 + $0x20] sm:$0xff]   ;;  %v1708_v51 = vld [vmem:[#allocation10 + $0x28] sm:$0xff]   ;;  %v1709_v52 = vld [vmem:[#allocation10 + $0x30] sm:$0xff]   ;;  %v749_v6 = vsub.s32 0, %v2434_v5  ;;  %p1927_p5 = pnand %p1926_p3, %p1920_p8 }
  0xed   : > { %1508 = vmatpush3.bf16.msra.mxu0 %v1668_v7  ;;  %v1710_v53 = vld [vmem:[#allocation10 + $0x38] sm:$0xff]   ;;  %v1711_v54 = vld [vmem:[#allocation11] ss:$8 sps:$4 sm:$0xff]   ;;  %v1713_v55 = vld [vmem:[#allocation11 + $0x4] ss:$8 sps:$4 sm:$0xff]  }
  0xee   : > { %1509 = vmatprep.subr.bf16.mxu0 %v1669_v8  ;;  %v1716_v56 = vld [vmem:[#allocation11 + $0x14] ss:$8 sps:$4 sm:$0xff]   ;;  %v1714_v57 = vld [vmem:[#allocation11 + $0x10] ss:$8 sps:$4 sm:$0xff]   ;;  %v1719_v58 = vld [vmem:[#allocation11 + $0x24] ss:$8 sps:$4 sm:$0xff]  }
  0xef   : > { %842 = vmatpush1.bf16.msra.mxu1 %v1687_v22  ;;  %v1717_v59 = vld [vmem:[#allocation11 + $0x20] ss:$8 sps:$4 sm:$0xff]   ;;  %v1722_v60 = vld [vmem:[#allocation11 + $0x34] ss:$8 sps:$4 sm:$0xff]   ;;  %v1720_v61 = vld [vmem:[#allocation11 + $0x30] ss:$8 sps:$4 sm:$0xff]  }
  0xf0   : > { %843 = vmatprep.subr.bf16.mxu1 %v1688_v23  ;;  %v1725_v62 = vld [vmem:[#allocation11 + $0x44] ss:$8 sps:$4 sm:$0xff]   ;;  %v1723_v63 = vld [vmem:[#allocation11 + $0x40] ss:$8 sps:$4 sm:$0xff]   ;;  %v1728_v0 = vld [vmem:[#allocation11 + $0x54] ss:$8 sps:$4 sm:$0xff]  }
  0xf1   : > { %1510 = vmatpush3.bf16.msra.mxu0 %v1670_v9  ;;  %v1726_v1 = vld [vmem:[#allocation11 + $0x50] ss:$8 sps:$4 sm:$0xff]   ;;  %v1731_v2 = vld [vmem:[#allocation11 + $0x64] ss:$8 sps:$4 sm:$0xff]   ;;  %v1729_v3 = vld [vmem:[#allocation11 + $0x60] ss:$8 sps:$4 sm:$0xff]  }
  0xf2   : > { %1511 = vmatprep.subr.bf16.mxu0 %v1671_v10  ;;  %v745_v7 = vld [vmem:[%s2573_s5] sm:$0x3]  ;;  %v753_v8 = vsub.s32 1, %v2434_v5  ;;  %v878_v19 = vld [vmem:[%s471_s18] sm:$0xff]  ;;  %s2464_s18 = scalar_lea.sflag [#allocation15], %s467_s28 }
  0xf3   : > { %844 = vmatpush1.bf16.msra.mxu1 %v1690_v25  ;;  %v750_v9 = vrot.slane %v745_v7, %v749_v6  ;;  %v1732_v25 = vld [vmem:[#allocation11 + $0x70] ss:$8 sps:$4 sm:$0xff]  }
  0xf4   : > { %845 = vmatprep.subr.bf16.mxu1 %v1691_v26  ;;  %v754_v10 = vrot.slane %v745_v7, %v753_v8  ;;  %v1463_v26 = vld [vmem:[%s2575_s7] ss:$0 sm:$0xff] }
  0xf5   : > { %1512 = vmatpush3.bf16.msra.mxu0 %v1672_v16 }
  0xf6   : > { %1513 = vmatprep.subr.bf16.mxu0 %v1673_v17 }
  0xf7   : > { %846 = vmatpush1.bf16.msra.mxu1 %v1693_v28 }
  0xf8   : > { %847 = vmatprep.subr.bf16.mxu1 %v1694_v29 }
  0xf9   : > { %1514 = vmatpush3.bf16.msra.mxu0 %v1674_v18 }
  0xfa   : > { %1515 = vmatprep.subr.bf16.mxu0 %v1675_v20 }
  0xfb   : > { %848 = vmatpush1.bf16.msra.mxu1 %v1696_v30 }
  0xfc   : > { %849 = vmatprep.subr.bf16.mxu1 %v1697_v31 }
  0xfd   : > { %1516 = vmatpush3.bf16.msra.mxu0 %v1676_v24  ;;  %v1734_v24 = vld [vmem:[#allocation11 + $0x74] ss:$8 sps:$4 sm:$0xff]  }
  0xfe   : > { %1532 = vmatprep.subr.bf16.mxu0 %v2072_v37 }
  0xff   : > { %850 = vmatpush1.bf16.msra.mxu1 %v1699_v32 }
 0x100   : > { %720 = vmatmul.mubr.bf16.vlgmr.msra.gmra.mrb[0].mxu0 %v1429_v27  ;;  %851 = vmatprep.subr.bf16.mxu1 %v1700_v33 }
 0x101   : > { %1533 = vmatpush3.bf16.msra.mxu0 %v1703_v36  ;;  %1548 = vmatprep.mubr.msk.bf16.mxu0 %vm2073_vm0, %v2072_v37 }
 0x102   : > { %1534 = vmatprep.subr.bf16.mxu0 %v2072_v37 }
 0x103   : > { %852 = vmatpush1.bf16.msra.mxu1 %v1702_v34 }
 0x104   : > { %1106 = vmatprep.subr.bf16.mxu1 %v1713_v55 }
 0x105   : > { %1535 = vmatpush3.bf16.msra.mxu0 %v1704_v38 }
 0x106   : > { %1536 = vmatprep.subr.bf16.mxu0 %v2072_v37 }
 0x109   : > { %1537 = vmatpush3.bf16.msra.mxu0 %v1705_v48 }
 0x10a   : > { %1538 = vmatprep.subr.bf16.mxu0 %v2072_v37 }
 0x10d   : > { %1539 = vmatpush3.bf16.msra.mxu0 %v1706_v49 }
 0x10e   : > { %1540 = vmatprep.subr.bf16.mxu0 %v2072_v37 }
 0x111   : > { %1541 = vmatpush3.bf16.msra.mxu0 %v1707_v50 }
 0x112   : > { %1542 = vmatprep.subr.bf16.mxu0 %v2072_v37 }
 0x115   : > { %1543 = vmatpush3.bf16.msra.mxu0 %v1708_v51 }
 0x116   : > { %1544 = vmatprep.subr.bf16.mxu0 %v2072_v37 }
 0x119   : > { %1545 = vmatpush3.bf16.msra.mxu0 %v1709_v52 }
 0x11a   : > { %1546 = vmatprep.subr.bf16.mxu0 %v2072_v37 }
 0x11d   : > { %1547 = vmatpush3.bf16.msra.mxu0 %v1710_v53 }
 0x1d3   : > { %v1517_v39 = vpop.f32.mrb[0].mxu0 }
 0x1d4   : > { %v1518_v41 = vpop.f32.mrb[1].mxu0 }
 0x1d5   : > { %v1519_v42 = vadd.f32 %v1518_v41, %v1517_v39  ;;  %v1520_v43 = vpop.f32.mrb[2].mxu0 }
 0x1d6   : > { %v1521_v44 = vpop.f32.mrb[3].mxu0 }
 0x1d7   : > { %v722_v45 = vadd.f32 %v1519_v42, %v1428_v40 }
 0x1d9   : > { %v727_v46 = vmax.f32 %v722_v45, 0.0 }
 0x1db   : > { %v728_v47 = vpack.c.bf16 %v727_v46, %v727_v46 }
 0x1dd   : > { %870 = vmatmul.mubr.bf16.vlgmr.msra.gmra.mrb[0].mxu1 %v728_v47 }
 0x1de   : > { %1138 = vmatprep.mubr.bf16.mxu1 %v2071_v35  ;;  %1107 = vmatpush1.bf16.msra.mxu1 %v1711_v54 }
 0x1df   : > { %1108 = vmatprep.subr.bf16.mxu1 %v1716_v56 }
 0x1e2   : > { %1109 = vmatpush1.bf16.msra.mxu1 %v1714_v57 }
 0x1e3   : > { %1110 = vmatprep.subr.bf16.mxu1 %v1719_v58 }
 0x1e6   : > { %1111 = vmatpush1.bf16.msra.mxu1 %v1717_v59 }
 0x1e7   : > { %1112 = vmatprep.subr.bf16.mxu1 %v1722_v60 }
 0x1ea   : > { %1113 = vmatpush1.bf16.msra.mxu1 %v1720_v61 }
 0x1eb   : > { %1114 = vmatprep.subr.bf16.mxu1 %v1725_v62 }
 0x1ee   : > { %1115 = vmatpush1.bf16.msra.mxu1 %v1723_v63 }
 0x1ef   : > { %1116 = vmatprep.subr.bf16.mxu1 %v1728_v0 }
 0x1f2   : > { %1117 = vmatpush1.bf16.msra.mxu1 %v1726_v1 }
 0x1f3   : > { %1118 = vmatprep.subr.bf16.mxu1 %v1731_v2 }
 0x1f6   : > { %1119 = vmatpush1.bf16.msra.mxu1 %v1729_v3 }
 0x1f7   : > { %1120 = vmatprep.subr.bf16.mxu1 %v1734_v24 }
 0x1fa   : > { %1121 = vmatpush1.bf16.msra.mxu1 %v1732_v25 }
 0x2b0   : > { %v871_v11 = vpop.f32.mrb[0].mxu1 }
 0x2b1   : > { %v872_v12 = vadd.f32 %v871_v11, %v750_v9  ;;  %v873_v13 = vpop.f32.mrb[1].mxu1 }
 0x2b2   : > { %v874_v14 = vadd.f32 %v873_v13, %v754_v10  ;;  %v875_v15 = vpop.f32.mrb[2].mxu1 }
 0x2b3   : > { %1159 = vst [vmem:[%s528_s14] sm:$0xff] %v872_v12  ;;  %v876_v16 = vpop.f32.mrb[3].mxu1 }
 0x2b4   : > { %v879_v17 = vmul.f32 0.5, %v874_v14  ;;  %1160 = vst [vmem:[%s535_s15] sm:$0xff] %v874_v14 }
 0x2b6   : > { %v880_v18 = vmul.f32 1.442695, %v879_v17 }
 0x2b8   : > { %1735 = vpow2.f32 %v880_v18 }
 0x2c2   : > { %v1736_v20 = vpop.eup %1735 }
 0x2c3   : > { %v882_v21 = vmul.f32 %v1736_v20, %v878_v19 }
 0x2c5   : > { %v883_v22 = vadd.f32 %v882_v21, %v872_v12 }
 0x2c7   : > { %v884_v23 = vpack.c.bf16 %v883_v22, %v883_v22 }
 0x2c9   : > { %1549 = vmatmul.mubr.bf16.vlgmr.msra.gmra.mrb[4].mxu0 %v884_v23 }
 0x39c   : > { %v990_v27 = vpop.f32.mrb[4].mxu0 }
 0x39d   : > { %v991_v28 = vadd.f32 %v1463_v26, %v990_v27  ;;  %v1550_v29 = vpop.f32.mrb[5].mxu0 }
 0x39e   : > { %v993_v30 = vpop.f32.mrb[6].mxu0 }
 0x39f   : > { %v996_v31 = vmax.f32 %v991_v28, 0.0  ;;  %v1551_v32 = vpop.f32.mrb[7].mxu0 }
 0x3a1   : > { %v997_v33 = vpack.c.bf16 %v996_v31, %v996_v31 }
 0x3a3   : > { %1139 = vmatmul.mubr.bf16.vlgmr.msra.gmra.mrb[4].mxu1 %v997_v33 }
 0x3a4   : > { %1930 = shalt.err (!%p1927_p5)
}
 0x3a5   : > { %s1931_s28 = scalar_lea.hbm %s2460_s2, 128  ;;  %s1935_s4 = scalar_lea.hbm %s2625_s10, 512 }
 0x3a6   : > { %p1932_p9 = scmp.ne.s32.totalorder %s2460_s2, %s1931_s28  ;;  %p1936_p10 = scmp.lt.u32.totalorder %s2460_s2, %s2625_s10 }
 0x3a7   : > { %p1937_p1 = scmp.lt.u32.totalorder %s1935_s4, %s1931_s28  ;;  %p1939_p12 = scmp.lt.u32.totalorder %s1931_s28, %s2460_s2 }
 0x3a8   : > { %p1933_p7 = pnand %p1932_p9, %p2626_p13 }
 0x3a9   : > { %p1938_p11 = por %p1937_p1, %p1936_p10 }
 0x3aa   : > { %p1934_p4 = pneg %p1933_p7 }
 0x3ab   : > { %p1940_p6 = por %p1939_p12, %p1938_p11 }
 0x3ad   : > { %p1941_p8 = pnand %p1940_p6, %p1934_p4 }
 0x3af   : > { %1944 = shalt.err (!%p1941_p8)
}
 0x3b0   : > { %1573 = dma.vmem_to_hbm [thread:$0]  (%p2626_p13), %s1201_s12, 128, %s2460_s2, %s2464_s18  }
 0x3b1   : > { %s2627_s29 = sld [smem:[#allocation30_spill]]  ;;  %s1187_s28 = sshll.u32 %s528_s14, 4  ;;  %s1188_s28 = int_to_ptr.vmem [resolvable:$true] %s1187_s28 }
 0x3b2   : > { %s1164_s15 = scalar_lea.sflag [#allocation4], %s2398_s30  ;;  %s1945_s19 = scalar_lea.vmem %s1188_s28, 128 }
 0x3b3   : > { %p1946_p0 = scmp.ne.s32.totalorder %s1188_s28, %s1945_s19  ;;  %s2075_s4 = smov [#allocation13]  }
 0x3b4   : > { %s1949_s9 = sshll.u32 %s2075_s4, 4  ;;  %s1950_s9 = int_to_ptr.vmem [resolvable:$false] %s1949_s9 }
 0x3b5   : > { %p1947_p2 = pnand %p1946_p0, %p2626_p13  ;;  %s1951_s17 = scalar_lea.vmem %s1950_s9, 256 }
 0x3b6   : > { %p1952_p5 = scmp.lt.s32.totalorder %s1188_s28, %s1950_s9  ;;  %p1953_p9 = scmp.lt.s32.totalorder %s1951_s17, %s1945_s19 }
 0x3b7   : > { %s2489_s13 = scalar_lea.hbm %s2627_s29, %s1493_s11  ;;  %p1948_p3 = pneg %p1947_p2 }
 0x3b8   : > { %p1954_p7 = por %p1953_p9, %p1952_p5 }
 0x3ba   : > { %p1955_p4 = pnand %p1954_p7, %p1948_p3 }
 0x3bc   : > { %1958 = shalt.err (!%p1955_p4)
}
 0x3bd   : > { %s1959_s6 = scalar_lea.hbm %s2489_s13, 128  ;;  %s1963_s2 = scalar_lea.hbm %s2627_s29, 512 }
 0x3be   : > { %p1960_p10 = scmp.ne.s32.totalorder %s2489_s13, %s1959_s6  ;;  %p1964_p12 = scmp.lt.u32.totalorder %s2489_s13, %s2627_s29 }
 0x3bf   : > { %p1965_p6 = scmp.lt.u32.totalorder %s1963_s2, %s1959_s6  ;;  %p1967_p0 = scmp.lt.u32.totalorder %s1959_s6, %s2489_s13 }
 0x3c0   : > { %p1961_p1 = pnand %p1960_p10, %p2626_p13 }
 0x3c1   : > { %p1966_p8 = por %p1965_p6, %p1964_p12 }
 0x3c2   : > { %p1962_p11 = pneg %p1961_p1 }
 0x3c3   : > { %p1968_p2 = por %p1967_p0, %p1966_p8 }
 0x3c5   : > { %p1969_p3 = pnand %p1968_p2, %p1962_p11 }
 0x3c7   : > { %1972 = shalt.err (!%p1969_p3)
}
 0x3c8   : > { %1572 = dma.vmem_to_hbm [thread:$0]  (%p2626_p13), %s1188_s28, 128, %s2489_s13, %s1164_s15  }
 0x3c9   : > { %s2628_s4 = sld [smem:[#allocation29_spill]]  ;;  %s1427_s13 = sshll.u32 %s2398_s30, 4 }
 0x3ca   : > { %s1500_s28 = sshll.u32 %s2163_s27, 8  ;;  %s542_s15 = scalar_lea.vmem [#allocation16], %s1427_s13 }
 0x3cb   : > { %s1214_s9 = sshll.u32 %s542_s15, 4  ;;  %s2629_s14 = sld [smem:[#allocation32_spill]]  ;;  %s2525_s9 = int_to_ptr.vmem [resolvable:$true] %s1214_s9 }
 0x3cc   : > { %s1973_s2 = scalar_lea.vmem %s2525_s9, 256  ;;  %s2076_s27 = smov [#allocation16]  }
 0x3cd   : > { %p1974_p5 = scmp.ne.s32.totalorder %s2525_s9, %s1973_s2  ;;  %s1977_s30 = sshll.u32 %s2076_s27, 4  ;;  %s1978_s30 = int_to_ptr.vmem [resolvable:$false] %s1977_s30 }
 0x3ce   : > { %s1979_s12 = scalar_lea.vmem %s1978_s30, 512  ;;  %p1980_p4 = scmp.lt.s32.totalorder %s2525_s9, %s1978_s30 }
 0x3cf   : > { %v1014_v34 = vld [vmem:[%s2628_s4] sm:$0x3]  ;;  %p1975_p9 = pnand %p1974_p5, %p2626_p13  ;;  %p1981_p10 = scmp.lt.s32.totalorder %s1979_s12, %s1973_s2 }
 0x3d0   : > { %v1019_v35 = vrot.slane %v1014_v34, %v749_v6  ;;  %v1023_v36 = vrot.slane %v1014_v34, %v753_v8 }
 0x3d1   : > { %s2523_s11 = scalar_lea.hbm %s2629_s14, %s1500_s28  ;;  %p1976_p7 = pneg %p1975_p9 }
 0x3d2   : > { %p1982_p1 = por %p1981_p10, %p1980_p4 }
 0x3d4   : > { %p1983_p11 = pnand %p1982_p1, %p1976_p7 }
 0x476   : > { %v1140_v37 = vpop.f32.mrb[4].mxu1 }
 0x477   : > { %v1141_v38 = vadd.f32 %v1140_v37, %v1019_v35  ;;  %v1142_v39 = vpop.f32.mrb[5].mxu1 }
 0x478   : > { %v1143_v40 = vadd.f32 %v1142_v39, %v1023_v36  ;;  %v1144_v41 = vpop.f32.mrb[6].mxu1 }
 0x479   : > { %v1488_v42 = vmul.f32 -1.442695, %v1141_v38  ;;  %v1145_v43 = vpop.f32.mrb[7].mxu1 }
 0x47a   : > { %v1489_v44 = vmul.f32 -1.442695, %v1143_v40 }
 0x47b   : > { %1737 = vpow2.f32 %v1488_v42 }
 0x47c   : > { %1739 = vpow2.f32 %v1489_v44 }
 0x485   : > { %v1738_v45 = vpop.eup %1737 }
 0x486   : > { %v1740_v46 = vpop.eup %1739  ;;  %v1153_v47 = vadd.f32 1.0, %v1738_v45 }
 0x487   : > { %v1154_v48 = vadd.f32 1.0, %v1740_v46 }
 0x488   : > { %1741 = vrcp.f32 %v1153_v47 }
 0x489   : > { %1743 = vrcp.f32 %v1154_v48 }
 0x492   : > { %v1742_v49 = vpop.eup %1741 }
 0x493   : > { %v1744_v50 = vpop.eup %1743  ;;  %1161 = vst [vmem:[%s542_s15] sm:$0xff] %v1742_v49 }
 0x494   : > { %1162 = vst [vmem:[%s542_s15 + $0x8] sm:$0xff] %v1744_v50 }
 0x495   : > { %1986 = shalt.err (!%p1983_p11)
}
 0x496   : > { %s1987_s20 = scalar_lea.hbm %s2523_s11, 256  ;;  %s1991_s4 = scalar_lea.hbm %s2629_s14, 1024 }
 0x497   : > { %p1988_p12 = scmp.ne.s32.totalorder %s2523_s11, %s1987_s20  ;;  %p1992_p0 = scmp.lt.u32.totalorder %s2523_s11, %s2629_s14 }
 0x498   : > { %p1993_p2 = scmp.lt.u32.totalorder %s1991_s4, %s1987_s20  ;;  %p1995_p5 = scmp.lt.u32.totalorder %s1987_s20, %s2523_s11 }
 0x499   : > { %p1989_p6 = pnand %p1988_p12, %p2626_p13 }
 0x49a   : > { %p1994_p3 = por %p1993_p2, %p1992_p0 }
 0x49b   : > { %p1990_p8 = pneg %p1989_p6 }
 0x49c   : > { %p1996_p9 = por %p1995_p5, %p1994_p3 }
 0x49e   : > { %p1997_p7 = pnand %p1996_p9, %p1990_p8 }
 0x4a0   : > { %2000 = shalt.err (!%p1997_p7)
}
 0x4a1   : > { %1574 = dma.vmem_to_hbm [thread:$0]  (%p2626_p13), %s2525_s9, 256, %s2523_s11, %s2464_s18  }
 0x4a2 PF: > { %p1617_p4 = scmp.ge.s32.totalorder %s2059_s24, 2  ;;  %s1226_s15 = sand.u32 1, %s2047_s21  }
 0x4a3   : > { %p2630_p10 = scmp.ne.s32.totalorder %s2615_s26, 0  ;;  %s1227_s17 = scalar_lea.sflag [#allocation4], %s1226_s15 }
 0x4a5   : > { %p1599_p1 = pnand %p1617_p4, %p2630_p10 }
 0x4a7   : > { %2038 = dma.done.wait (!%p1599_p1), %s1227_s17, 128  }
 0x4a8   : > { %2040 = vsyncadd (!%p1599_p1), %s1227_s17, 4294967168  ;;  %s2631_s6 = sadd.s32 4294967294, %s2059_s24  }
 0x4a9   : > { %s1235_s2 = sand.u32 1, %s2631_s6  }
 0x4aa   : > { %s1236_s27 = scalar_lea.sflag [#allocation15], %s1235_s2 }
 0x4ab   : > { %2042 = dma.done.wait (!%p1599_p1), %s1236_s27, 384  }
 0x4ac   : > { %2044 = vsyncadd (!%p1599_p1), %s1236_s27, 4294966912  ;;  %s2632_s16 = sld [smem:[#allocation24_spill]]  ;;  %p34_p13 = scmp.ge.s32.totalorder %s2289_s25, 6  }
 0x4ad   : > { %s2633_s21 = smov %s2051_s22  ;;  %s2634_s22 = smov %s2055_s23 }
 0x4ae   : > { %s2636_s24 = smov %s2289_s25  ;;  %36 = sbr.rel (!%p34_p13) target bundleno = 20 (0x14), region = 166 }
 0x4b2   : > { %s2635_s23 = smov %s2632_s16 }
 0x4b5   :  { %1250 = vsyncpa [#allocation3], 1 }
 0x4b6   :  { %1252 = vsyncpa [#allocation3 + $0x1], 1 }
 0x4b7   :  { %1253 = vsyncpa [#allocation6], 1 }
 0x4b8   :  { %1255 = vsyncpa [#allocation6 + $0x1], 1 }
 0x4b9   :  { %1256 = vsyncpa [#allocation9], 1 }
 0x4ba   :  { %1257 = vsyncpa [#allocation12], 1 }
 0x4bb   :  { %1258 = vsyncpa [#allocation4], 1 }
 0x4bc   :  { %1260 = vsyncpa [#allocation4 + $0x1], 1 }
 0x4bd   :  { %1261 = vsyncpa [#allocation15], 1 }
 0x4be   :  { %1263 = vsyncpa [#allocation15 + $0x1], 1 }

</bundles_post_ra>
